<compile_context>
chip_gen: v7x
topology: tpu7x:2x2x1
jax: 0.10.0
libtpu: 0.0.40
codegen_flags: <defaults>
</compile_context>

<pallas_src>
import functools

import jax
import jax.numpy as jnp
from jax import lax
from jax.experimental import pallas as pl
from jax.experimental.pallas import tpu as pltpu


def _ntxent_kernel(emb_i_ref, emb_j_ref, out_ref, *, temperature: float, batch: int):
    # emb_i_ref / emb_j_ref: (B, D) in VMEM (native dtype); out_ref: (1,) f32 SMEM.
    inv_t = 1.0 / temperature
    scale = inv_t ** 0.5  # folded into the normalization

    def normalize_and_scale(x):
        x = x.astype(jnp.float32)
        sq = jnp.sum(x * x, axis=1, keepdims=True)            # (B, 1)
        # Clamping sq at 1e-24 == clamping the norm at 1e-12 (F.normalize eps).
        return x * (lax.rsqrt(jnp.maximum(sq, 1e-24)) * scale)

    zi = normalize_and_scale(emb_i_ref[...])                   # (B, D) f32, carries sqrt(1/T)
    zj = normalize_and_scale(emb_j_ref[...])
    zib = zi.astype(jnp.bfloat16)                              # bf16 MXU operands
    zjb = zj.astype(jnp.bfloat16)

    def sim(a, b):
        # a @ b.T on the MXU, f32 accumulation.  Result already includes 1/T.
        return lax.dot_general(a, b, (((1,), (1,)), ((), ())),
                               preferred_element_type=jnp.float32)  # (B, B)

    # Off-diagonal mask for the two symmetric quadrants: exact removal of the
    # self-similarity term regardless of bf16 rounding of the diagonal.
    rows = lax.broadcasted_iota(jnp.int32, (batch, batch), 0)
    cols = lax.broadcasted_iota(jnp.int32, (batch, batch), 1)
    offdiag = rows != cols

    # Quadrant ii: matmul -> exp -> mask -> row-sum; (B,B) tile dies here.
    e = jnp.where(offdiag, jnp.exp(sim(zib, zib)), 0.0)
    row_ii = jnp.sum(e, axis=1, keepdims=True)                 # (B, 1)

    # Quadrant ij: row sums feed denom_i; column sums feed denom_j (they equal
    # the row sums of the dropped e_ji = e_ij.T quadrant).  No transpose.
    e = jnp.exp(sim(zib, zjb))
    row_ij = jnp.sum(e, axis=1, keepdims=True)                 # (B, 1)
    col_ij = jnp.sum(e, axis=0, keepdims=True)                 # (1, B)

    # Quadrant jj (symmetric): column sums == row sums; keep (1, B) layout.
    e = jnp.where(offdiag, jnp.exp(sim(zjb, zjb)), 0.0)
    col_jj = jnp.sum(e, axis=0, keepdims=True)                 # (1, B)

    # positives[r] = sim[r, r+B] = sim[r+B, r] = <zi[r], zj[r]> / T (the
    # sqrt(1/T) fold makes zi.zj already carry 1/T); identical for both halves
    # so weight by 2.  Computed on the f32 vectors (cheap B*D VPU reduce).
    pos = jnp.sum(zi * zj, axis=1, keepdims=True)              # (B, 1)

    # loss_r = -log(exp(pos_r) / denom_r) = log(denom_r) - pos_r
    # TODO(synk): matches the PyTorch reference (no log-sum-exp max shift);
    # a streamed production version should use a running-max online softmax.
    total = (jnp.sum(jnp.log(row_ii + row_ij))
             + jnp.sum(jnp.log(col_ij + col_jj))
             - 2.0 * jnp.sum(pos))
    out_ref[0] = total / (2 * batch)


def contrastive_loss(emb_i, emb_j, temperature: float = 0.5):
    """NT-Xent contrastive loss matching the PyTorch ContrastiveLoss.forward."""
    B, D = emb_i.shape
    assert emb_j.shape == (B, D)
    kernel = functools.partial(
        _ntxent_kernel, temperature=float(temperature), batch=B)

    itemsize = max(jnp.dtype(emb_i.dtype).itemsize, jnp.dtype(emb_j.dtype).itemsize)
    vmem_bytes = (2 * 2 * B * D * itemsize      # inputs (double-buffer headroom)
                  + 2 * B * D * (4 + 2)         # f32 normalized + bf16 MXU operands
                  + 2 * B * B * 4               # <= ~2 live (B,B) f32 tiles
                  + (1 << 20))                  # slack
    vmem_bytes = int(max(min(vmem_bytes, 64 << 20), 2 << 20))

    out = pl.pallas_call(
        kernel,
        out_shape=jax.ShapeDtypeStruct((1,), jnp.float32),
        in_specs=[pl.BlockSpec((B, D), lambda: (0, 0)),
                  pl.BlockSpec((B, D), lambda: (0, 0))],
        out_specs=pl.BlockSpec(memory_space=pltpu.SMEM),
        compiler_params=pltpu.CompilerParams(vmem_limit_bytes=vmem_bytes),
    )(emb_i, emb_j)
    return out[0]


def _reference_loss(emb_i, emb_j, temperature=0.5):
    # Pure-JAX (f32) reference mirroring the PyTorch module, for verification.
    def normalize(x):
        n = jnp.sqrt(jnp.sum(x * x, axis=1, keepdims=True))
        return x / jnp.maximum(n, 1e-12)

    B = emb_i.shape[0]
    z = jnp.concatenate([normalize(emb_i), normalize(emb_j)], axis=0)
    sim = z @ z.T
    sim_ij = jnp.diagonal(sim, offset=B)
    sim_ji = jnp.diagonal(sim, offset=-B)
    positives = jnp.concatenate([sim_ij, sim_ji], axis=0)
    nominator = jnp.exp(positives / temperature)
    neg_mask = 1.0 - jnp.eye(2 * B, dtype=jnp.float32)
    denominator = jnp.sum(neg_mask * jnp.exp(sim / temperature), axis=1)
    loss_partial = -jnp.log(nominator / denominator)
    return jnp.sum(loss_partial) / (2 * B)


if __name__ == "__main__":
    key = jax.random.PRNGKey(0)
    k1, k2 = jax.random.split(key)
    batch, hidden = 8, 32
    emb_i = jax.random.normal(k1, (batch, hidden), dtype=jnp.float32)
    emb_j = jax.random.normal(k2, (batch, hidden), dtype=jnp.float32)

    loss = contrastive_loss(emb_i, emb_j, temperature=0.5)
    jax.block_until_ready(loss)

    ref = _reference_loss(emb_i, emb_j, temperature=0.5)
    # bf16 MXU operands introduce ~1e-3-scale rounding in the cosine sims;
    # the resulting loss agrees with the f32 reference well inside 5e-3.
    assert jnp.allclose(loss, ref, atol=5e-3, rtol=5e-3), (loss, ref)

    print("KERNEL_OK")
</pallas_src>

<mosaic_0001>
module attributes {stable_mosaic.version = 11 : i64} {
  func.func @_ntxent_kernel(%arg0: memref<8x32xf32, #tpu.memory_space<vmem>>, %arg1: memref<8x32xf32, #tpu.memory_space<vmem>>, %arg2: memref<1xf32, #tpu.memory_space<smem>>) attributes {dimension_semantics = [], scalar_prefetch = 0 : i64, scratch_operands = 0 : i64, tpu.core_type = #tpu.core_type<tc>} {
    %c0 = arith.constant 0 : index
    %c0_0 = arith.constant 0 : index
    %0 = vector.load %arg0[%c0, %c0_0] : memref<8x32xf32, #tpu.memory_space<vmem>>, vector<8x32xf32>
    %1 = arith.mulf %0, %0 : vector<8x32xf32>
    %cst = arith.constant dense<0.000000e+00> : vector<8xf32>
    %2 = vector.multi_reduction <add>, %1, %cst [1] : vector<8x32xf32> to vector<8xf32>
    %3 = vector.shape_cast %2 : vector<8xf32> to vector<8x1xf32>
    %cst_1 = arith.constant 1.000000e-24 : f32
    %4 = vector.broadcast %cst_1 : f32 to vector<8x1xf32>
    %5 = arith.maximumf %3, %4 : vector<8x1xf32>
    %6 = math.rsqrt %5 : vector<8x1xf32>
    %cst_2 = arith.constant 1.41421354 : f32
    %7 = vector.broadcast %cst_2 : f32 to vector<8x1xf32>
    %8 = arith.mulf %6, %7 : vector<8x1xf32>
    %9 = vector.broadcast %8 : vector<8x1xf32> to vector<8x32xf32>
    %10 = arith.mulf %0, %9 : vector<8x32xf32>
    %c0_3 = arith.constant 0 : index
    %c0_4 = arith.constant 0 : index
    %11 = vector.load %arg1[%c0_3, %c0_4] : memref<8x32xf32, #tpu.memory_space<vmem>>, vector<8x32xf32>
    %12 = arith.mulf %11, %11 : vector<8x32xf32>
    %cst_5 = arith.constant dense<0.000000e+00> : vector<8xf32>
    %13 = vector.multi_reduction <add>, %12, %cst_5 [1] : vector<8x32xf32> to vector<8xf32>
    %14 = vector.shape_cast %13 : vector<8xf32> to vector<8x1xf32>
    %cst_6 = arith.constant 1.000000e-24 : f32
    %15 = vector.broadcast %cst_6 : f32 to vector<8x1xf32>
    %16 = arith.maximumf %14, %15 : vector<8x1xf32>
    %17 = math.rsqrt %16 : vector<8x1xf32>
    %cst_7 = arith.constant 1.41421354 : f32
    %18 = vector.broadcast %cst_7 : f32 to vector<8x1xf32>
    %19 = arith.mulf %17, %18 : vector<8x1xf32>
    %20 = vector.broadcast %19 : vector<8x1xf32> to vector<8x32xf32>
    %21 = arith.mulf %11, %20 : vector<8x32xf32>
    %22 = arith.truncf %10 : vector<8x32xf32> to vector<8x32xbf16>
    %23 = arith.truncf %21 : vector<8x32xf32> to vector<8x32xbf16>
    %24 = tpu.iota {dimensions = array<i32: 0>} : vector<8x8xi32>
    %25 = tpu.iota {dimensions = array<i32: 1>} : vector<8x8xi32>
    %26 = arith.cmpi ne, %24, %25 : vector<8x8xi32>
    %cst_8 = arith.constant dense<0.000000e+00> : vector<8x8xf32>
    %27 = tpu.matmul %22, %22, %cst_8 {dimension_numbers = #tpu.dot_dimension_numbers<[1], [1], [0], [0], [0, 0, 1, 0], [], []>} : vector<8x32xbf16>, vector<8x32xbf16>, vector<8x8xf32> -> vector<8x8xf32>
    %28 = math.exp %27 : vector<8x8xf32>
    %cst_9 = arith.constant 0.000000e+00 : f32
    %29 = vector.broadcast %cst_9 : f32 to vector<8x8xf32>
    %30 = arith.select %26, %28, %29 : vector<8x8xi1>, vector<8x8xf32>
    %cst_10 = arith.constant dense<0.000000e+00> : vector<8xf32>
    %31 = vector.multi_reduction <add>, %30, %cst_10 [1] : vector<8x8xf32> to vector<8xf32>
    %32 = vector.shape_cast %31 : vector<8xf32> to vector<8x1xf32>
    %cst_11 = arith.constant dense<0.000000e+00> : vector<8x8xf32>
    %33 = tpu.matmul %22, %23, %cst_11 {dimension_numbers = #tpu.dot_dimension_numbers<[1], [1], [0], [0], [0, 0, 1, 0], [], []>} : vector<8x32xbf16>, vector<8x32xbf16>, vector<8x8xf32> -> vector<8x8xf32>
    %34 = math.exp %33 : vector<8x8xf32>
    %cst_12 = arith.constant dense<0.000000e+00> : vector<8xf32>
    %35 = vector.multi_reduction <add>, %34, %cst_12 [1] : vector<8x8xf32> to vector<8xf32>
    %36 = vector.shape_cast %35 : vector<8xf32> to vector<8x1xf32>
    %cst_13 = arith.constant dense<0.000000e+00> : vector<8xf32>
    %37 = vector.multi_reduction <add>, %34, %cst_13 [0] : vector<8x8xf32> to vector<8xf32>
    %38 = vector.shape_cast %37 : vector<8xf32> to vector<1x8xf32>
    %cst_14 = arith.constant dense<0.000000e+00> : vector<8x8xf32>
    %39 = tpu.matmul %23, %23, %cst_14 {dimension_numbers = #tpu.dot_dimension_numbers<[1], [1], [0], [0], [0, 0, 1, 0], [], []>} : vector<8x32xbf16>, vector<8x32xbf16>, vector<8x8xf32> -> vector<8x8xf32>
    %40 = math.exp %39 : vector<8x8xf32>
    %cst_15 = arith.constant 0.000000e+00 : f32
    %41 = vector.broadcast %cst_15 : f32 to vector<8x8xf32>
    %42 = arith.select %26, %40, %41 : vector<8x8xi1>, vector<8x8xf32>
    %cst_16 = arith.constant dense<0.000000e+00> : vector<8xf32>
    %43 = vector.multi_reduction <add>, %42, %cst_16 [0] : vector<8x8xf32> to vector<8xf32>
    %44 = vector.shape_cast %43 : vector<8xf32> to vector<1x8xf32>
    %45 = arith.mulf %10, %21 : vector<8x32xf32>
    %cst_17 = arith.constant dense<0.000000e+00> : vector<8xf32>
    %46 = vector.multi_reduction <add>, %45, %cst_17 [1] : vector<8x32xf32> to vector<8xf32>
    %47 = vector.shape_cast %46 : vector<8xf32> to vector<8x1xf32>
    %48 = arith.addf %32, %36 : vector<8x1xf32>
    %49 = math.log %48 : vector<8x1xf32>
    %50 = vector.shape_cast %49 : vector<8x1xf32> to vector<1x8x1xf32>
    %cst_18 = arith.constant dense<0.000000e+00> : vector<1xf32>
    %51 = vector.multi_reduction <add>, %50, %cst_18 [1, 2] : vector<1x8x1xf32> to vector<1xf32>
    %52 = vector.shape_cast %51 : vector<1xf32> to vector<1x1x1xf32>
    %53 = vector.extract %52[0, 0, 0] : f32 from vector<1x1x1xf32>
    %54 = arith.addf %38, %44 : vector<1x8xf32>
    %55 = math.log %54 : vector<1x8xf32>
    %56 = vector.shape_cast %55 : vector<1x8xf32> to vector<1x1x8xf32>
    %cst_19 = arith.constant dense<0.000000e+00> : vector<1xf32>
    %57 = vector.multi_reduction <add>, %56, %cst_19 [1, 2] : vector<1x1x8xf32> to vector<1xf32>
    %58 = vector.shape_cast %57 : vector<1xf32> to vector<1x1x1xf32>
    %59 = vector.extract %58[0, 0, 0] : f32 from vector<1x1x1xf32>
    %60 = arith.addf %53, %59 : f32
    %61 = vector.shape_cast %47 : vector<8x1xf32> to vector<1x8x1xf32>
    %cst_20 = arith.constant dense<0.000000e+00> : vector<1xf32>
    %62 = vector.multi_reduction <add>, %61, %cst_20 [1, 2] : vector<1x8x1xf32> to vector<1xf32>
    %63 = vector.shape_cast %62 : vector<1xf32> to vector<1x1x1xf32>
    %64 = vector.extract %63[0, 0, 0] : f32 from vector<1x1x1xf32>
    %cst_21 = arith.constant 2.000000e+00 : f32
    %65 = arith.mulf %cst_21, %64 : f32
    %66 = arith.subf %60, %65 : f32
    %cst_22 = arith.constant 1.600000e+01 : f32
    %67 = arith.divf %66, %cst_22 : f32
    %c0_23 = arith.constant 0 : index
    %68 = memref.load %arg2[%c0_23] : memref<1xf32, #tpu.memory_space<smem>>
    memref.store %67, %arg2[%c0_23] : memref<1xf32, #tpu.memory_space<smem>>
    return
  }
}

</mosaic_0001>

<bundles_post_ra>
// kernel: tpu_custom_call.1
= control target key start
LH: loop header
LB: loop body
LE: loop exit
PB: predicated region body
PF: predicated region fallthrough
CT: control target
= control target key end

     0   :  { %7 = vsyncpa [#allocation3], 0  ;;  %s461_s0 = inlined_call_operand.hbm [shape: f32[8,32], index: 0, kind: input, shape index: {}]   ;;  %s462_s1 = inlined_call_operand.hbm [shape: f32[8,32], index: 1, kind: input, shape index: {}]   ;;  %s463_s2 = inlined_call_operand.hbm [shape: f32[1], index: 2, kind: output, shape index: {}]  }
   0x1   :  { %8 = vsyncpa [#allocation6], 0 }
   0x2   :  { %9 = vsyncpa [#allocation4], 0  ;;  %s394_s9 = smov [#allocation2]   ;;  %s395_s11 = smov [#allocation5]  }
   0x3   :  { %s16_s10 = sshll.u32 %s394_s9, 4  ;;  %s26_s12 = sshll.u32 %s395_s11, 4  ;;  %s17_s10 = int_to_ptr.vmem [resolvable:$true] %s16_s10  ;;  %s27_s12 = int_to_ptr.vmem [resolvable:$true] %s26_s12 }
   0x4   :  { %s334_s15 = scalar_lea.hbm %s461_s0, 128 }
   0x5   :  { %p335_p0 = scmp.ne.s32.totalorder %s461_s0, %s334_s15  ;;  %p338_p1 = scmp.lt.u32.totalorder %s334_s15, %s461_s0 }
   0x7   :  { %p340_p2 = pnand %p338_p1, %p335_p0 }
   0x9   :  { %343 = shalt.err (!%p340_p2)
}
   0xa   :  { %s344_s20 = scalar_lea.vmem %s17_s10, 128  ;;  %p349_p4 = scmp.lt.s32.totalorder %s17_s10, %s17_s10 }
   0xb   :  { %p345_p3 = scmp.ne.s32.totalorder %s17_s10, %s344_s20  ;;  %p350_p5 = scmp.lt.s32.totalorder %s344_s20, %s344_s20 }
   0xd   :  { %p351_p6 = por %p350_p5, %p349_p4 }
   0xf   :  { %p352_p7 = pnand %p351_p6, %p345_p3 }
  0x11   :  { %355 = shalt.err (!%p352_p7)
}
  0x12   :  { %19 = dma.hbm_to_vmem [thread:$0]  %s461_s0, 128, %s17_s10, [#allocation3]  }
  0x13   :  { %s356_s25 = scalar_lea.hbm %s462_s1, 128 }
  0x14   :  { %p357_p8 = scmp.ne.s32.totalorder %s462_s1, %s356_s25  ;;  %p360_p9 = scmp.lt.u32.totalorder %s356_s25, %s462_s1 }
  0x16   :  { %p362_p10 = pnand %p360_p9, %p357_p8 }
  0x18   :  { %365 = shalt.err (!%p362_p10)
}
  0x19   :  { %s366_s30 = scalar_lea.vmem %s27_s12, 128  ;;  %p371_p12 = scmp.lt.s32.totalorder %s27_s12, %s27_s12 }
  0x1a   :  { %p367_p11 = scmp.ne.s32.totalorder %s27_s12, %s366_s30  ;;  %p372_p13 = scmp.lt.s32.totalorder %s366_s30, %s366_s30 }
  0x1c   :  { %p373_p0 = por %p372_p13, %p371_p12 }
  0x1e   :  { %p374_p1 = pnand %p373_p0, %p367_p11 }
  0x20   :  { %377 = shalt.err (!%p374_p1)
}
  0x21   :  { %29 = dma.hbm_to_vmem [thread:$0]  %s462_s1, 128, %s27_s12, [#allocation6]  }
  0x22   :  { %388 = dma.done.wait [#allocation3], 128  }
  0x23   :  { %389 = vsyncadd [#allocation3], 4294967168 }
  0x24   :  { %390 = dma.done.wait [#allocation6], 128  }
  0x25   :  { %391 = vsyncadd [#allocation6], 4294967168  ;;  %v37_v0 = vld [vmem:[#allocation2] sm:$0xff]  ;;  %vm39_vm0 = vcmask 261120   ;;  %v47_v1 = vld [vmem:[#allocation5] sm:$0xff]  ;;  %v396_v6 = vmov 0.0   ;;  %v58_v28 = vlaneseq }
  0x26   :  { %v38_v2 = vmul.f32 %v37_v0, %v37_v0  ;;  %v48_v3 = vmul.f32 %v47_v1, %v47_v1  ;;  %291 = vmatprep.subr.bf16.mxu0 %v396_v6  ;;  %297 = vmatprep.subr.bf16.mxu1 %v396_v6  ;;  %vm397_vm1 = vmmov 0   ;;  %vm109_vm3 = vcmask 64512   ;;  %s378_s12 = scalar_lea.hbm %s463_s2, 16 }
  0x27   :  { %293 = vmatprep.mubr.msk.bf16.mxu0 %vm397_vm1, %v396_v6  ;;  %299 = vmatprep.mubr.msk.bf16.mxu1 %vm397_vm1, %v396_v6  ;;  %v59_v34 = vshrl.u32 %v58_v28, 7  ;;  %v61_v35 = vand.u32 127, %v58_v28  ;;  %vm238_vm4 = vcmask 57344   ;;  %vm224_vm5 = vcmask 7168   ;;  %p379_p2 = scmp.ne.s32.totalorder %s463_s2, %s378_s12  ;;  %p382_p3 = scmp.lt.u32.totalorder %s378_s12, %s463_s2 }
  0x28   :  { %v40_v4 = vsel %vm39_vm0, %v38_v2, 0.0  ;;  %v49_v5 = vsel %vm39_vm0, %v48_v3, 0.0 }
  0x29   :  { %41 = vadd.xlane.f32.xlu0 %v40_v4  ;;  %vm62_vm2 = vcmp.ne.s32.totalorder %v59_v34, %v61_v35  ;;  %p384_p4 = pnand %p382_p3, %p379_p2 }
  0x2d   :  { %50 = vadd.xlane.f32.xlu0 %v49_v5 }
  0xb6   :  { %v42_v7 = vpop.xlane.xlu0 %41 }
  0xb7   :  { %v43_v8 = vmax.f32 %v42_v7, 1e-24 }
  0xb9   :  { %320 = vrsqrt.f32 %v43_v8 }
  0xba   :  { %v51_v9 = vpop.xlane.xlu0 %50 }
  0xbb   :  { %v52_v10 = vmax.f32 %v51_v9, 1e-24 }
  0xbd   :  { %322 = vrsqrt.f32 %v52_v10 }
  0xc3   :  { %v321_v11 = vpop.eup %320 }
  0xc4   :  { %v45_v12 = vmul.f32 1.4142135, %v321_v11 }
  0xc6   :  { %v46_v13 = vmul.f32 %v45_v12, %v37_v0 }
  0xc7   :  { %v323_v14 = vpop.eup %322 }
  0xc8   :  { %v54_v15 = vmul.f32 1.4142135, %v323_v14  ;;  %v56_v16 = vpack.c.bf16 %v46_v13, %v46_v13 }
  0xca   :  { %v64_v17 = vsel %vm39_vm0, %v56_v16, 0  ;;  %v55_v18 = vmul.f32 %v54_v15, %v47_v1 }
  0xcb   :  { %292 = vmatpush3.bf16.xpose.msra.mxu0 %v64_v17 }
  0xcc   :  { %v217_v19 = vmul.f32 %v55_v18, %v46_v13  ;;  %v57_v20 = vpack.c.bf16 %v55_v18, %v55_v18  ;;  %303 = vmatprep.subr.bf16.mxu0 %v396_v6 }
  0xce   :  { %v218_v21 = vsel %vm39_vm0, %v217_v19, 0.0  ;;  %v114_v22 = vsel %vm39_vm0, %v57_v20, 0 }
  0xcf   :  { %219 = vadd.xlane.f32.xlu0 %v218_v21  ;;  %298 = vmatpush3.bf16.xpose.msra.mxu1 %v114_v22 }
  0xd2   :  { %294 = vmatmul.mubr.msk.bf16.vlgmr.msra.gmra.mrb[0].mxu0 %vm39_vm0, %v56_v16 }
  0xd3   :  { %304 = vmatpush3.bf16.xpose.msra.mxu0 %v114_v22  ;;  %305 = vmatprep.mubr.msk.bf16.mxu0 %vm397_vm1, %v396_v6 }
  0xd6   :  { %300 = vmatmul.mubr.msk.bf16.vlgmr.msra.gmra.mrb[0].mxu1 %vm39_vm0, %v56_v16 }
  0xda   :  { %306 = vmatmul.mubr.msk.bf16.vlgmr.msra.gmra.mrb[4].mxu0 %vm39_vm0, %v57_v20 }
 0x15c   :  { %v220_v7 = vpop.xlane.xlu0 %219 }
 0x15d   :  { %v250_v8 = vsel %vm224_vm5, %v220_v7, 0.0 }
 0x1a5   :  { %v100_v23 = vpop.f32.mrb[0].mxu0 }
 0x1a6   :  { %v106_v24 = vmul.f32 1.442695, %v100_v23  ;;  %v295_v25 = vpop.f32.mrb[1].mxu0 }
 0x1a7   :  { %v103_v26 = vpop.f32.mrb[2].mxu0 }
 0x1a8   :  { %324 = vpow2.f32 %v106_v24  ;;  %v296_v27 = vpop.f32.mrb[3].mxu0 }
 0x1a9   :  { %v150_v29 = vpop.f32.mrb[0].mxu1 }
 0x1aa   :  { %v156_v30 = vmul.f32 1.442695, %v150_v29  ;;  %v301_v31 = vpop.f32.mrb[1].mxu1 }
 0x1ab   :  { %v153_v32 = vpop.f32.mrb[2].mxu1 }
 0x1ac   :  { %326 = vpow2.f32 %v156_v30  ;;  %v302_v33 = vpop.f32.mrb[3].mxu1 }
 0x1ad   :  { %v201_v36 = vpop.f32.mrb[4].mxu0 }
 0x1ae   :  { %v207_v37 = vmul.f32 1.442695, %v201_v36  ;;  %v307_v38 = vpop.f32.mrb[5].mxu0 }
 0x1af   :  { %v204_v39 = vpop.f32.mrb[6].mxu0 }
 0x1b0   :  { %328 = vpow2.f32 %v207_v37  ;;  %v308_v40 = vpop.f32.mrb[7].mxu0 }
 0x1b2   :  { %v325_v41 = vpop.eup %324 }
 0x1b3   :  { %v108_v42 = vsel %vm62_vm2, %v325_v41, 0.0 }
 0x1b4   :  { %v110_v43 = vsel %vm109_vm3, %v108_v42, 0.0 }
 0x1b5   :  { %111 = vadd.xlane.f32.xlu1 %v110_v43 }
 0x1b6   :  { %v327_v44 = vpop.eup %326 }
 0x1b7   :  { %v158_v45 = vsel %vm109_vm3, %v327_v44, 0.0 }
 0x1b8   :  { %v161_v46 = vrot.slane %v158_v45, 4 }
 0x1b9   :  { %159 = vadd.xlane.f32.xlu1 %v158_v45 }
 0x1ba   :  { %v329_v47 = vpop.eup %328  ;;  %v162_v48 = vadd.f32 %v161_v46, %v158_v45 }
 0x1bb   :  { %v209_v49 = vsel %vm62_vm2, %v329_v47, 0.0 }
 0x1bc   :  { %v210_v50 = vsel %vm109_vm3, %v209_v49, 0.0  ;;  %v163_v51 = vrot.slane %v162_v48, 2 }
 0x1bd   :  { %v211_v52 = vrot.slane %v210_v50, 4 }
 0x1be   :  { %v164_v54 = vadd.f32 %v163_v51, %v162_v48 }
 0x1bf   :  { %v212_v53 = vadd.f32 %v211_v52, %v210_v50 }
 0x1c0   :  { %v165_v57 = vrot.slane %v164_v54, 1 }
 0x1c1   :  { %v213_v55 = vrot.slane %v212_v53, 2 }
 0x1c2   :  { %v166_v59 = vadd.f32 %v165_v57, %v164_v54 }
 0x1c3   :  { %v214_v56 = vadd.f32 %v213_v55, %v212_v53 }
 0x1c5   :  { %v215_v58 = vrot.slane %v214_v56, 1 }
 0x1c7   :  { %v216_v60 = vadd.f32 %v215_v58, %v214_v56 }
 0x1c9   :  { %v235_v61 = vadd.f32 %v216_v60, %v166_v59 }
 0x1cb   :  { %330 = vlog2.f32 %v235_v61 }
 0x1d5   :  { %v331_v62 = vpop.eup %330 }
 0x1d6   :  { %v237_v63 = vmul.f32 0.6931472, %v331_v62 }
 0x1d8   :  { %v239_v0 = vsel %vm238_vm4, %v237_v63, 0.0 }
 0x1d9   :  { %240 = vadd.xlane.f32.xlu0 %v239_v0 }
 0x242   :  { %v112_v1 = vpop.xlane.xlu1 %111 }
 0x246   :  { %v160_v2 = vpop.xlane.xlu1 %159 }
 0x247   :  { %v221_v3 = vadd.f32 %v160_v2, %v112_v1 }
 0x249   :  { %332 = vlog2.f32 %v221_v3 }
 0x253   :  { %v333_v4 = vpop.eup %332 }
 0x254   :  { %v223_v5 = vmul.f32 0.6931472, %v333_v4 }
 0x256   :  { %v225_v6 = vsel %vm224_vm5, %v223_v5, 0.0 }
 0x257   :  { %226 = vadd.xlane.f32.xlu1 %v225_v6 }
 0x25b   :  { %251 = vadd.xlane.f32.xlu1 %v250_v8 }
 0x266   :  { %v241_v9 = vpop.xlane.xlu0 %240 }
 0x267   :  { %v242_v10 = vrot.slane %v241_v9, 4 }
 0x269   :  { %v243_v11 = vadd.f32 %v242_v10, %v241_v9 }
 0x26b   :  { %v244_v12 = vrot.slane %v243_v11, 2 }
 0x26d   :  { %v245_v16 = vadd.f32 %v244_v12, %v243_v11 }
 0x26f   :  { %v246_v22 = vrot.slane %v245_v16, 1 }
 0x271   :  { %v247_v27 = vadd.f32 %v246_v22, %v245_v16 }
 0x2e4   :  { %v227_v13 = vpop.xlane.xlu1 %226 }
 0x2e5   :  { %v228_v14 = vrot.slane %v227_v13, 4 }
 0x2e7   :  { %v229_v15 = vadd.f32 %v228_v14, %v227_v13 }
 0x2e8   :  { %v252_v17 = vpop.xlane.xlu1 %251 }
 0x2e9   :  { %v230_v18 = vrot.slane %v229_v15, 2  ;;  %v253_v19 = vrot.slane %v252_v17, 4 }
 0x2eb   :  { %v254_v20 = vadd.f32 %v253_v19, %v252_v17  ;;  %v231_v21 = vadd.f32 %v230_v18, %v229_v15 }
 0x2ed   :  { %v255_v23 = vrot.slane %v254_v20, 2  ;;  %v232_v24 = vrot.slane %v231_v21, 1 }
 0x2ef   :  { %v256_v25 = vadd.f32 %v255_v23, %v254_v20  ;;  %v233_v26 = vadd.f32 %v232_v24, %v231_v21 }
 0x2f1   :  { %309 = vpush %v233_v26  ;;  %v257_v28 = vrot.slane %v256_v25, 1 }
 0x2f2   :  { %311 = vpush %v247_v27 }
 0x2f3   :  { %v258_v29 = vadd.f32 %v257_v28, %v256_v25 }
 0x2f5   :  { %313 = vpush %v258_v29 }
 0x322   :  { %s310_s1 = spop %309 }
 0x323   :  { %s312_s4 = spop %311 }
 0x324   :  { %s249_s6 = sadd.f32 %s312_s4, %s310_s1 }
 0x326   :  { %s314_s5 = spop %313 }
 0x327   :  { %s260_s7 = smul.f32 2.0, %s314_s5 }
 0x329   :  { %s261_s8 = ssub.f32 %s249_s6, %s260_s7 }
 0x32b   :  { %s264_s9 = smul.f32 0.0625, %s261_s8 }
 0x32d   :  { %266 = sst [smem:[#allocation7]] %s264_s9 }
 0x32e   :  { %387 = shalt.err (!%p384_p4)
}
 0x32f   :  { %s398_s17 = smov [#allocation7]  }
 0x330   :  { %274 = dma.smem_to_hbm %s398_s17, 16, %s463_s2, [#allocation4]  }
 0x331   :  { %392 = dma.done.wait [#allocation4], 16  }
 0x332   :  { %393 = vsyncadd [#allocation4], 4294967280 }
 0x333   :  { %278 = sfence }
 0x334   :  { %279 = vsyncpa [#allocation3], 1 }
 0x335   :  { %280 = vsyncpa [#allocation6], 1 }
 0x336   :  { %281 = vsyncpa [#allocation4], 1 }

</bundles_post_ra>
